<compile_context>
chip_gen: v7x
topology: tpu7x:2x2x1
jax: 0.10.0
libtpu: 0.0.40
codegen_flags: <defaults>
</compile_context>

<pallas_src>
import warnings
from functools import partial

import jax
import jax.numpy as jnp
from jax import lax
from jax.experimental import pallas as pl
from jax.experimental.pallas import tpu as pltpu

# If XLA cannot chain the donated buffer through the reshapes it just skips the
# alias (correct, slightly slower); silence the advisory warning in that case.
warnings.filterwarnings("ignore", message="Some donated buffers were not usable")


# ---------------------------------------------------------------------------
# Chip-aware VMEM budgeting: one source of truth for the compiler limit and
# the tiler budget.  v5e/v6e: 128 MiB VMEM; v7x: 64 MiB per TensorCore.
# ---------------------------------------------------------------------------
def _vmem_capacity_bytes() -> int:
    try:
        return int(pltpu.get_tpu_info().vmem_capacity_bytes)
    except Exception:
        return 64 * 1024 * 1024  # conservative (v7x-sized) default


_VMEM_CAP = _vmem_capacity_bytes()
_VMEM_LIMIT = int(_VMEM_CAP * 0.82)       # ~105 MiB on v5e/v6e, ~52 MiB on v7x
_TILE_BUDGET = int(_VMEM_LIMIT * 0.80)    # budget for double-buffered in+out blocks
# v7x-like chips (64 MiB / TC, 2 TCs) shard the "parallel" batch axis: keep the
# grid length even so the cores stay balanced.  Harmless on single-TC chips.
_PREFER_EVEN_GRID = _VMEM_CAP <= 64 * 1024 * 1024


# ---------------------------------------------------------------------------
# Fused single-pass kernel: pools + MLP + sigmoid + scale on a (Bt, C, HW) block
# ---------------------------------------------------------------------------
def _channel_gate_kernel(x_ref, w1_ref, b1_ref, w2_ref, b2_ref, o_ref):
    x = x_ref[...]                                     # (Bt, C, HW) f32
    hw = x.shape[-1]

    # Global pools over the spatial (lane) axis -> XLU slot, VPU stays free.
    # (Fusing sum+max into a single fori_loop pass would cut vld pressure ~33%,
    #  but the kernel is HBM-streaming bound, so it is not on the critical path.)
    avg = jnp.sum(x, axis=-1) * (1.0 / hw)             # (Bt, C)
    mx = jnp.max(x, axis=-1)                           # (Bt, C)

    # MLP(avg) + MLP(mx) without the sublane concat/split:
    #   relu(avg@W1+b1)@W2 + b2 + relu(mx@W1+b1)@W2 + b2
    # = (relu(avg@W1+b1) + relu(mx@W1+b1)) @ W2 + 2*b2
    w1 = w1_ref[...]
    b1 = b1_ref[...]
    h_avg = jnp.maximum(jnp.dot(avg, w1, preferred_element_type=jnp.float32) + b1, 0.0)
    h_max = jnp.maximum(jnp.dot(mx, w1, preferred_element_type=jnp.float32) + b1, 0.0)
    att = (jnp.dot(h_avg + h_max, w2_ref[...], preferred_element_type=jnp.float32)
           + 2.0 * b2_ref[...])                        # (Bt, C)
    scale = jax.nn.sigmoid(att)

    # Lane-dense store: last dim is HW.
    o_ref[...] = x * scale[:, :, None]


# ---------------------------------------------------------------------------
# Two-pass fallback kernels (for feature maps where one image's in+out blocks
# do not fit the per-TC VMEM budget, e.g. C=64, H=W=256 on v7x).
# ---------------------------------------------------------------------------
def _pool_kernel(hw_total, x_ref, sum_ref, max_ref):
    """Accumulate per-(b, c) sum / max over HW chunks."""
    hc = pl.program_id(1)
    x = x_ref[...]                                     # (Bt, C, hw_chunk)
    chunk = x.shape[-1]
    pos = lax.broadcasted_iota(jnp.int32, x.shape, 2) + hc * chunk
    valid = pos < hw_total                             # mask the partial last chunk
    s = jnp.sum(jnp.where(valid, x, 0.0), axis=-1, keepdims=True)       # (Bt, C, 1)
    m = jnp.max(jnp.where(valid, x, -jnp.inf), axis=-1, keepdims=True)  # (Bt, C, 1)

    @pl.when(hc == 0)
    def _():
        sum_ref[...] = s
        max_ref[...] = m

    @pl.when(hc > 0)
    def _():
        sum_ref[...] = sum_ref[...] + s
        max_ref[...] = jnp.maximum(max_ref[...], m)


def _scale_kernel(x_ref, s_ref, o_ref):
    # s_ref: (Bt, C, 1) broadcasts over the spatial lanes.
    o_ref[...] = x_ref[...] * s_ref[...]


# ---------------------------------------------------------------------------
# Tiling heuristics
# ---------------------------------------------------------------------------
def _pick_batch_tile(B, per_image_bytes, budget_bytes, prefer_even_grid):
    """Largest batch tile whose double-buffered in+out blocks fit the budget.

    Returns None if a single image does not fit (caller uses the two-pass
    fallback).  On v7x-like chips, prefer an even number of grid steps so the
    two TensorCores sharding the 'parallel' batch axis stay balanced.
    """
    max_bt = int(budget_bytes // per_image_bytes)
    if max_bt < 1:
        return None
    bt = int(min(B, max_bt))
    if prefer_even_grid and B > 1:
        for cand in range(bt, 0, -1):
            if (-(-B // cand)) % 2 == 0:
                return cand
    return bt


def _pick_hw_chunk(C, HW, dtype_bytes, budget_bytes):
    """Spatial chunk (multiple of 128 lanes, bt=1) for the two-pass fallback."""
    max_elems = budget_bytes // (4 * C * dtype_bytes)  # in + out, double-buffered
    chunk = (max_elems // 128) * 128
    return int(max(128, min(HW, chunk)))


# ---------------------------------------------------------------------------
# pallas_call wrappers
# ---------------------------------------------------------------------------
def _fused_call(x3, w1t, b1r, w2t, b2r, bt):
    B, C, HW = x3.shape
    Cr = w1t.shape[1]
    itemsize = x3.dtype.itemsize
    cost = pl.CostEstimate(
        flops=int(3 * B * C * HW + 8 * B * C * Cr),
        transcendentals=int(B * C),
        bytes_accessed=int(2 * B * C * HW * itemsize + (2 * C * Cr + C + Cr) * 4),
    )
    return pl.pallas_call(
        _channel_gate_kernel,
        out_shape=jax.ShapeDtypeStruct((B, C, HW), x3.dtype),
        grid_spec=pltpu.PrefetchScalarGridSpec(
            num_scalar_prefetch=0,
            grid=(pl.cdiv(B, bt),),                    # non-divisor tiles allowed
            in_specs=[
                pl.BlockSpec((bt, C, HW), lambda b: (b, 0, 0)),
                pl.BlockSpec((C, Cr), lambda b: (0, 0)),
                pl.BlockSpec((1, Cr), lambda b: (0, 0)),
                pl.BlockSpec((Cr, C), lambda b: (0, 0)),
                pl.BlockSpec((1, C), lambda b: (0, 0)),
            ],
            out_specs=pl.BlockSpec((bt, C, HW), lambda b: (b, 0, 0)),
        ),
        compiler_params=pltpu.CompilerParams(
            dimension_semantics=("parallel",),
            vmem_limit_bytes=_VMEM_LIMIT,
        ),
        cost_estimate=cost,
        # Pure in-place scale of x: reuse its HBM buffer (x is donated at jit).
        input_output_aliases={0: 0},
    )(x3, w1t, b1r, w2t, b2r)


def _two_pass_call(x3, w1t, b1r, w2t, b2r, tile_budget):
    B, C, HW = x3.shape
    itemsize = x3.dtype.itemsize
    hw_chunk = _pick_hw_chunk(C, HW, itemsize, tile_budget)
    bt = 1
    grid = (pl.cdiv(B, bt), pl.cdiv(HW, hw_chunk))

    # Pass 1: accumulate global sum / max pools over HW chunks.
    sum_pool, max_pool = pl.pallas_call(
        partial(_pool_kernel, HW),
        out_shape=(jax.ShapeDtypeStruct((B, C, 1), jnp.float32),
                   jax.ShapeDtypeStruct((B, C, 1), jnp.float32)),
        grid_spec=pltpu.PrefetchScalarGridSpec(
            num_scalar_prefetch=0,
            grid=grid,
            in_specs=[pl.BlockSpec((bt, C, hw_chunk), lambda b, h: (b, 0, h))],
            out_specs=[pl.BlockSpec((bt, C, 1), lambda b, h: (b, 0, 0)),
                       pl.BlockSpec((bt, C, 1), lambda b, h: (b, 0, 0))],
        ),
        compiler_params=pltpu.CompilerParams(
            dimension_semantics=("parallel", "arbitrary"),
            vmem_limit_bytes=_VMEM_LIMIT,
        ),
        cost_estimate=pl.CostEstimate(
            flops=int(2 * B * C * HW), transcendentals=0,
            bytes_accessed=int(B * C * HW * itemsize)),
    )(x3)

    # Tiny (B, C) MLP + sigmoid between the two streaming passes: negligible
    # next to the HBM traffic, so it stays as plain XLA ops.
    avg = sum_pool[:, :, 0] * (1.0 / HW)
    mx = max_pool[:, :, 0]
    h_avg = jnp.maximum(avg @ w1t + b1r, 0.0)
    h_max = jnp.maximum(mx @ w1t + b1r, 0.0)
    scale = jax.nn.sigmoid((h_avg + h_max) @ w2t + 2.0 * b2r)
    scale = scale.astype(x3.dtype)[:, :, None]         # (B, C, 1)

    # Pass 2: elementwise scale streamed over the same HW chunks.
    return pl.pallas_call(
        _scale_kernel,
        out_shape=jax.ShapeDtypeStruct((B, C, HW), x3.dtype),
        grid_spec=pltpu.PrefetchScalarGridSpec(
            num_scalar_prefetch=0,
            grid=grid,
            in_specs=[pl.BlockSpec((bt, C, hw_chunk), lambda b, h: (b, 0, h)),
                      pl.BlockSpec((bt, C, 1), lambda b, h: (b, 0, 0))],
            out_specs=pl.BlockSpec((bt, C, hw_chunk), lambda b, h: (b, 0, h)),
        ),
        compiler_params=pltpu.CompilerParams(
            dimension_semantics=("parallel", "parallel"),
            vmem_limit_bytes=_VMEM_LIMIT,
        ),
        cost_estimate=pl.CostEstimate(
            flops=int(B * C * HW), transcendentals=0,
            bytes_accessed=int(2 * B * C * HW * itemsize)),
        input_output_aliases={0: 0},
    )(x3, scale)


# ---------------------------------------------------------------------------
# Public entry point
# ---------------------------------------------------------------------------
@partial(jax.jit, static_argnums=(5, 6), donate_argnums=(0,))
def _channel_gate_impl(x, w1, b1, w2, b2, force_two_pass, tile_budget):
    B, C, H, W = x.shape
    HW = H * W
    Cr = w1.shape[0]

    # Native NCHW kept: flatten spatial (pure reshape, no transpose / HBM pass).
    x3 = x.reshape(B, C, HW)

    # PyTorch Linear computes v @ W.T + b; pre-transpose the tiny weights once.
    w1t = jnp.transpose(w1)            # (C, Cr)
    w2t = jnp.transpose(w2)            # (Cr, C)
    b1r = b1.reshape(1, Cr)
    b2r = b2.reshape(1, C)

    per_image = 4 * C * HW * x.dtype.itemsize          # in + out, double-buffered
    bt = None if force_two_pass else _pick_batch_tile(
        B, per_image, tile_budget, _PREFER_EVEN_GRID)

    if bt is None:
        out3 = _two_pass_call(x3, w1t, b1r, w2t, b2r, tile_budget)
    else:
        out3 = _fused_call(x3, w1t, b1r, w2t, b2r, bt)
    return out3.reshape(B, C, H, W)


def channel_gate(x_nchw, w1, b1, w2, b2, *, force_two_pass=False, tile_budget=None):
    """CBAM ChannelGate forward.

    x_nchw: (B, C, H, W); w1: (C//r, C), b1: (C//r,), w2: (C, C//r), b2: (C,)
    in PyTorch nn.Linear layout.  `x_nchw` is DONATED: the output reuses its HBM
    buffer (pure in-place scale), so callers must not reuse x afterwards.
    """
    if tile_budget is None:
        tile_budget = _TILE_BUDGET
    return _channel_gate_impl(x_nchw, w1, b1, w2, b2,
                              bool(force_two_pass), int(tile_budget))


# ---------------------------------------------------------------------------
# Pure-JAX reference mirroring the PyTorch forward
# ---------------------------------------------------------------------------
def _reference(x, w1, b1, w2, b2):
    avg = jnp.mean(x, axis=(2, 3))                     # (B, C)
    mx = jnp.max(x, axis=(2, 3))                       # (B, C)

    def mlp(v):
        h = jnp.maximum(v @ w1.T + b1, 0.0)
        return h @ w2.T + b2

    att = mlp(avg) + mlp(mx)
    scale = jax.nn.sigmoid(att)[:, :, None, None]
    return x * scale


if __name__ == "__main__":
    B, C, H, W = 2, 64, 16, 16
    reduction_ratio = 16
    Cr = C // reduction_ratio

    key = jax.random.PRNGKey(0)
    kx, k1, k2, k3, k4 = jax.random.split(key, 5)

    shape = (B, C, H, W)
    x = jax.random.normal(kx, shape, dtype=jnp.float32)
    # Separate buffer with identical values (both calls donate their input).
    x_fallback = jax.random.normal(kx, shape, dtype=jnp.float32)

    # Deterministic synthetic parameters (PyTorch Linear weight layout: (out, in)).
    w1 = jax.random.normal(k1, (Cr, C), dtype=jnp.float32) * 0.1
    b1 = jax.random.normal(k2, (Cr,), dtype=jnp.float32) * 0.1
    w2 = jax.random.normal(k3, (C, Cr), dtype=jnp.float32) * 0.1
    b2 = jax.random.normal(k4, (C,), dtype=jnp.float32) * 0.1

    # Reference BEFORE the kernel (the kernel output aliases the donated input).
    ref = jax.block_until_ready(_reference(x, w1, b1, w2, b2))

    # Main fused path.
    out = jax.block_until_ready(channel_gate(x, w1, b1, w2, b2))
    assert out.shape == shape and out.dtype == jnp.float32
    assert jnp.allclose(out, ref, atol=1e-5, rtol=1e-5), "fused path mismatch"

    # Exercise the two-pass (HW-chunked) fallback with a tiny tile budget so the
    # spatial axis is split into multiple chunks (hw_chunk = 128 -> 2 chunks).
    out2 = jax.block_until_ready(
        channel_gate(x_fallback, w1, b1, w2, b2,
                     force_two_pass=True,
                     tile_budget=4 * C * 128 * 4))
    assert jnp.allclose(out2, ref, atol=1e-5, rtol=1e-5), "two-pass path mismatch"

    print("KERNEL_OK")
</pallas_src>

<mosaic_0001>
module attributes {stable_mosaic.version = 11 : i64} {
  func.func @_channel_gate_kernel(%arg0: i32, %arg1: memref<1x64x256xf32, #tpu.memory_space<vmem>>, %arg2: memref<64x4xf32, #tpu.memory_space<vmem>>, %arg3: memref<1x4xf32, #tpu.memory_space<vmem>>, %arg4: memref<4x64xf32, #tpu.memory_space<vmem>>, %arg5: memref<1x64xf32, #tpu.memory_space<vmem>>, %arg6: memref<1x64x256xf32, #tpu.memory_space<vmem>>) attributes {dimension_semantics = [#tpu.dimension_semantics<parallel>], iteration_bounds = array<i64: 2>, scalar_prefetch = 0 : i64, scratch_operands = 0 : i64, tpu.core_type = #tpu.core_type<tc>, window_params = [{transform_indices = @transform_0, window_bounds = array<i64: 1, 64, 256>}, {pipeline_mode = #tpu.pipeline_mode<synchronous>, transform_indices = @transform_1, window_bounds = array<i64: 64, 4>}, {pipeline_mode = #tpu.pipeline_mode<synchronous>, transform_indices = @transform_2, window_bounds = array<i64: 1, 4>}, {pipeline_mode = #tpu.pipeline_mode<synchronous>, transform_indices = @transform_3, window_bounds = array<i64: 4, 64>}, {pipeline_mode = #tpu.pipeline_mode<synchronous>, transform_indices = @transform_4, window_bounds = array<i64: 1, 64>}, {transform_indices = @transform_5, window_bounds = array<i64: 1, 64, 256>}]} {
    %c0 = arith.constant 0 : index
    %c0_0 = arith.constant 0 : index
    %c0_1 = arith.constant 0 : index
    %0 = vector.load %arg1[%c0, %c0_0, %c0_1] : memref<1x64x256xf32, #tpu.memory_space<vmem>>, vector<1x64x256xf32>
    %cst = arith.constant dense<0.000000e+00> : vector<1x64xf32>
    %1 = vector.multi_reduction <add>, %0, %cst [2] : vector<1x64x256xf32> to vector<1x64xf32>
    %cst_2 = arith.constant 3.906250e-03 : f32
    %2 = vector.broadcast %cst_2 : f32 to vector<1x64xf32>
    %3 = arith.mulf %1, %2 : vector<1x64xf32>
    %cst_3 = arith.constant dense<0xFF800000> : vector<1x64xf32>
    %4 = vector.multi_reduction <maximumf>, %0, %cst_3 [2] : vector<1x64x256xf32> to vector<1x64xf32>
    %c0_4 = arith.constant 0 : index
    %c0_5 = arith.constant 0 : index
    %5 = vector.load %arg2[%c0_4, %c0_5] : memref<64x4xf32, #tpu.memory_space<vmem>>, vector<64x4xf32>
    %c0_6 = arith.constant 0 : index
    %c0_7 = arith.constant 0 : index
    %6 = vector.load %arg3[%c0_6, %c0_7] : memref<1x4xf32, #tpu.memory_space<vmem>>, vector<1x4xf32>
    %cst_8 = arith.constant dense<0.000000e+00> : vector<1x4xf32>
    %7 = tpu.matmul %3, %5, %cst_8 {dimension_numbers = #tpu.dot_dimension_numbers<[1], [0], [0], [1], [0, 0, 1, 1], [], []>} : vector<1x64xf32>, vector<64x4xf32>, vector<1x4xf32> -> vector<1x4xf32>
    %8 = arith.addf %7, %6 : vector<1x4xf32>
    %cst_9 = arith.constant 0.000000e+00 : f32
    %9 = vector.broadcast %cst_9 : f32 to vector<1x4xf32>
    %10 = arith.maximumf %8, %9 : vector<1x4xf32>
    %cst_10 = arith.constant dense<0.000000e+00> : vector<1x4xf32>
    %11 = tpu.matmul %4, %5, %cst_10 {dimension_numbers = #tpu.dot_dimension_numbers<[1], [0], [0], [1], [0, 0, 1, 1], [], []>} : vector<1x64xf32>, vector<64x4xf32>, vector<1x4xf32> -> vector<1x4xf32>
    %12 = arith.addf %11, %6 : vector<1x4xf32>
    %cst_11 = arith.constant 0.000000e+00 : f32
    %13 = vector.broadcast %cst_11 : f32 to vector<1x4xf32>
    %14 = arith.maximumf %12, %13 : vector<1x4xf32>
    %15 = arith.addf %10, %14 : vector<1x4xf32>
    %c0_12 = arith.constant 0 : index
    %c0_13 = arith.constant 0 : index
    %16 = vector.load %arg4[%c0_12, %c0_13] : memref<4x64xf32, #tpu.memory_space<vmem>>, vector<4x64xf32>
    %cst_14 = arith.constant dense<0.000000e+00> : vector<1x64xf32>
    %17 = tpu.matmul %15, %16, %cst_14 {dimension_numbers = #tpu.dot_dimension_numbers<[1], [0], [0], [1], [0, 0, 1, 1], [], []>} : vector<1x4xf32>, vector<4x64xf32>, vector<1x64xf32> -> vector<1x64xf32>
    %c0_15 = arith.constant 0 : index
    %c0_16 = arith.constant 0 : index
    %18 = vector.load %arg5[%c0_15, %c0_16] : memref<1x64xf32, #tpu.memory_space<vmem>>, vector<1x64xf32>
    %cst_17 = arith.constant 2.000000e+00 : f32
    %19 = vector.broadcast %cst_17 : f32 to vector<1x64xf32>
    %20 = arith.mulf %19, %18 : vector<1x64xf32>
    %21 = arith.addf %17, %20 : vector<1x64xf32>
    %22 = arith.negf %21 : vector<1x64xf32>
    %23 = math.exp %22 : vector<1x64xf32>
    %cst_18 = arith.constant 1.000000e+00 : f32
    %24 = vector.broadcast %cst_18 : f32 to vector<1x64xf32>
    %25 = arith.addf %24, %23 : vector<1x64xf32>
    %26 = arith.divf %24, %25 : vector<1x64xf32>
    %27 = vector.shape_cast %26 : vector<1x64xf32> to vector<1x64x1xf32>
    %28 = vector.broadcast %27 : vector<1x64x1xf32> to vector<1x64x256xf32>
    %29 = arith.mulf %0, %28 : vector<1x64x256xf32>
    %c0_19 = arith.constant 0 : index
    %c0_20 = arith.constant 0 : index
    %c0_21 = arith.constant 0 : index
    %30 = vector.load %arg6[%c0_19, %c0_20, %c0_21] : memref<1x64x256xf32, #tpu.memory_space<vmem>>, vector<1x64x256xf32>
    tpu.vector_store %arg6[%c0_19, %c0_20, %c0_21], %29 {strides = array<i32>} : memref<1x64x256xf32, #tpu.memory_space<vmem>>, vector<1x64x256xf32>,
    return
  }
  func.func @transform_0(%arg0: i32) -> (i32, i32, i32) {
    %c0_i32 = arith.constant 0 : i32
    %c0_i32_0 = arith.constant 0 : i32
    %c0_i32_1 = arith.constant 0 : i32
    return %arg0, %c0_i32, %c0_i32_0 : i32, i32, i32
  }
  func.func @transform_1(%arg0: i32) -> (i32, i32) {
    %c0_i32 = arith.constant 0 : i32
    %c0_i32_0 = arith.constant 0 : i32
    %c0_i32_1 = arith.constant 0 : i32
    return %c0_i32, %c0_i32_0 : i32, i32
  }
  func.func @transform_2(%arg0: i32) -> (i32, i32) {
    %c0_i32 = arith.constant 0 : i32
    %c0_i32_0 = arith.constant 0 : i32
    %c0_i32_1 = arith.constant 0 : i32
    return %c0_i32, %c0_i32_0 : i32, i32
  }
  func.func @transform_3(%arg0: i32) -> (i32, i32) {
    %c0_i32 = arith.constant 0 : i32
    %c0_i32_0 = arith.constant 0 : i32
    %c0_i32_1 = arith.constant 0 : i32
    return %c0_i32, %c0_i32_0 : i32, i32
  }
  func.func @transform_4(%arg0: i32) -> (i32, i32) {
    %c0_i32 = arith.constant 0 : i32
    %c0_i32_0 = arith.constant 0 : i32
    %c0_i32_1 = arith.constant 0 : i32
    return %c0_i32, %c0_i32_0 : i32, i32
  }
  func.func @transform_5(%arg0: i32) -> (i32, i32, i32) {
    %c0_i32 = arith.constant 0 : i32
    %c0_i32_0 = arith.constant 0 : i32
    %c0_i32_1 = arith.constant 0 : i32
    return %arg0, %c0_i32, %c0_i32_0 : i32, i32, i32
  }
}

</mosaic_0001>

<bundles_post_ra>
// kernel: _channel_gate_impl.1
= control target key start
LH: loop header
LB: loop body
LE: loop exit
PB: predicated region body
PF: predicated region fallthrough
CT: control target
= control target key end

     0   :  { %s934_s18 = smov 0   ;;  %s1139_s0 = inlined_call_operand.vmem [shape: f32[2,64,256], index: 0, kind: input, shape index: {}, may-alias: {0,5}]   ;;  %s1140_s1 = inlined_call_operand.vmem [shape: f32[64,4], index: 1, kind: input, shape index: {}]   ;;  %s1141_s2 = inlined_call_operand.vmem [shape: f32[1,4], index: 2, kind: input, shape index: {}]   ;;  %s1142_s3 = inlined_call_operand.vmem [shape: f32[4,64], index: 3, kind: input, shape index: {}]   ;;  %s1143_s4 = inlined_call_operand.vmem [shape: f32[1,64], index: 4, kind: input, shape index: {}]   ;;  %s1144_s5 = inlined_call_operand.vmem [shape: f32[2,64,256], index: 5, kind: output, shape index: {}, may-alias: {0,5}]  }
   0x1 LB: > { %s773_s19 = sadd.s32 4294967295, %s899_s18   ;;  %p777_p0 = scmp.ge.s32.totalorder %s899_s18, 1  ;;  %s899_s18 = sphi %s934_s18, %s15_s18  }
   0x2   : > { %p187_p1 = scmp.lt.s32.totalorder %s899_s18, 3 }
   0x4   : > { %p188_p2 = pnand %p777_p0, %p187_p1 }
   0x5   : > { %p215_p3 = scmp.lt.s32.totalorder (!%p188_p2), %s773_s19, 1  ;;  %v297_v32 = vld [vmem:[%s1140_s1] sm:$0xff] (!%p188_p2)  ;;  %v298_v33 = vld [vmem:[%s1140_s1 + $0x8] sm:$0xff] (!%p188_p2)  ;;  %v901_v35 = vmov (!%p188_p2), 0.0|0.0   ;;  %v299_v36 = vld [vmem:[%s1140_s1 + $0x10] sm:$0xff] (!%p188_p2)  ;;  %vm902_vm0 = vmmov (!%p188_p2), 0   ;;  %v314_v48 = vlaneseq (!%p188_p2) }
   0x6   : > { %191 = sbr.rel (%p188_p2) target bundleno = 788 (0x314), region = 40  ;;  %v855_v34 = vpack.c.bf16 (!%p188_p2), %v298_v33, %v297_v32  ;;  %854 = vmatprep.subr.bf16.mxu0 (!%p188_p2), %v901_v35  ;;  %866 = vmatprep.subr.bf16.mxu1 (!%p188_p2), %v901_v35  ;;  %v300_v37 = vld [vmem:[%s1140_s1 + $0x18] sm:$0xff] (!%p188_p2)  ;;  %v301_v39 = vld [vmem:[%s1140_s1 + $0x20] sm:$0xff] (!%p188_p2)  ;;  %v302_v40 = vld [vmem:[%s1140_s1 + $0x28] sm:$0xff] (!%p188_p2)  ;;  %v903_v45 = vmov (!%p188_p2), 0.0   ;;  %vm325_vm1 = vcmask (!%p188_p2), 130112  }
   0x7   : > { %v858_v38 = vpack.c.bf16 (!%p188_p2), %v300_v37, %v299_v36  ;;  %v861_v41 = vpack.c.bf16 (!%p188_p2), %v302_v40, %v301_v39  ;;  %v303_v42 = vld [vmem:[%s1140_s1 + $0x30] sm:$0xff] (!%p188_p2)  ;;  %v304_v43 = vld [vmem:[%s1140_s1 + $0x38] sm:$0xff] (!%p188_p2)  ;;  %827 = vmatprep.mubr.msk.f32.mxu0 (!%p188_p2), %vm902_vm0, %v903_v45  ;;  %846 = vmatprep.mubr.msk.f32.mxu1 (!%p188_p2), %vm902_vm0, %v903_v45  ;;  %v315_v51 = vand.u32 (!%p188_p2), 127, %v314_v48  ;;  %v1061_v55 = vshrl.u32 (!%p188_p2), %v314_v48, 7 }
   0x8   : > { %856 = vmatpush3.bf16.msra.mxu0 (!%p188_p2), %v855_v34  ;;  %868 = vmatpush3.bf16.msra.mxu1 (!%p188_p2), %v855_v34  ;;  %v864_v44 = vpack.c.bf16 (!%p188_p2), %v304_v43, %v303_v42  ;;  %vm332_vm2 = vcmask (!%p188_p2), 195712   ;;  %vm339_vm3 = vcmask (!%p188_p2), 261312   ;;  %vm346_vm4 = vcmask (!%p188_p2), 326912  }
   0x9   : > { %857 = vmatprep.subr.bf16.mxu0 (!%p188_p2), %v901_v35  ;;  %869 = vmatprep.subr.bf16.mxu1 (!%p188_p2), %v901_v35  ;;  %v320_v52 = vadd.s32 (!%p188_p2), 4294967288, %v315_v51  ;;  %v327_v59 = vadd.s32 (!%p188_p2), 4294967280, %v315_v51  ;;  %v318_v61 = vsub.s32 (!%p188_p2), %v315_v51, %v1061_v55  ;;  %v334_v63 = vadd.s32 (!%p188_p2), 4294967272, %v315_v51 }
   0xa   : > { %v362_v33 = vadd.s32 (!%p188_p2), 4294967240, %v315_v51  ;;  %vm353_vm5 = vcmask (!%p188_p2), 392512   ;;  %vm360_vm6 = vcmask (!%p188_p2), 458112   ;;  %vm367_vm7 = vcmask (!%p188_p2), 523712  }
   0xb   : > { %v323_v56 = vsub.s32 (!%p188_p2), %v320_v52, %v1061_v55  ;;  %vm369_vm8 = vcmask (!%p188_p2), 523264   ;;  %vm571_vm9 = vcmask (!%p188_p2), 1043456   ;;  %vm567_vm10 = vcmask (!%p188_p2), 31744  }
   0xc   : > { %859 = vmatpush3.bf16.msra.mxu0 (!%p188_p2), %v858_v38  ;;  %871 = vmatpush3.bf16.msra.mxu1 (!%p188_p2), %v858_v38 }
   0xd   : > { %s1146_s19 = smov (!%p215_p3, %s773_s19), 1  ;;  %860 = vmatprep.subr.bf16.mxu0 %v901_v35  ;;  %872 = vmatprep.subr.bf16.mxu1 %v901_v35 }
   0xe   : > { %s789_s20 = sshll.u32 %s1146_s19, 7 }
   0xf   : > { %s950_s23 = scalar_lea.vmem %s1139_s0, %s789_s20  ;;  %s1102_s26 = scalar_lea.vmem %s1144_s5, %s789_s20 }
  0x10   : > { %v953_v0 = vld [vmem:[%s950_s23 + $0x20] sm:$0xff]  ;;  %v956_v1 = vld [vmem:[%s950_s23 + $0x28] sm:$0xff]  ;;  %v967_v5 = vld [vmem:[%s950_s23 + $0x30] sm:$0xff]  ;;  %862 = vmatpush3.bf16.msra.mxu0 %v861_v41  ;;  %874 = vmatpush3.bf16.msra.mxu1 %v861_v41 }
  0x11   : > { %v959_v2 = vld [vmem:[%s950_s23] sm:$0xff]  ;;  %v247_v3 = vadd.f32 %v956_v1, %v953_v0  ;;  %v964_v4 = vld [vmem:[%s950_s23 + $0x8] sm:$0xff]  ;;  %v970_v6 = vld [vmem:[%s950_s23 + $0x38] sm:$0xff]  ;;  %v279_v16 = vmax.f32 %v953_v0, %v956_v1  ;;  %863 = vmatprep.subr.bf16.mxu0 %v901_v35  ;;  %875 = vmatprep.subr.bf16.mxu1 %v901_v35 }
  0x12   : > { %v241_v7 = vadd.f32 %v964_v4, %v959_v2  ;;  %v975_v8 = vld [vmem:[%s950_s23 + $0x10] sm:$0xff]  ;;  %v978_v9 = vld [vmem:[%s950_s23 + $0x18] sm:$0xff]  ;;  %v250_v10 = vadd.f32 %v970_v6, %v967_v5  ;;  %v273_v13 = vmax.f32 %v959_v2, %v964_v4  ;;  %v989_v14 = vld [vmem:[%s950_s23 + $0x40] sm:$0xff]  ;;  %v282_v20 = vmax.f32 %v967_v5, %v970_v6 }
  0x13   : > { %248 = vadd.xlane.f32.xlu1 %v247_v3  ;;  %v244_v11 = vadd.f32 %v978_v9, %v975_v8  ;;  %v276_v12 = vmax.f32 %v975_v8, %v978_v9  ;;  %v992_v15 = vld [vmem:[%s950_s23 + $0x48] sm:$0xff]  ;;  %v999_v18 = vld [vmem:[%s950_s23 + $0x50] sm:$0xff]  ;;  %v1002_v19 = vld [vmem:[%s950_s23 + $0x58] sm:$0xff]  ;;  %v341_v3 = vadd.s32 4294967264, %v315_v51 }
  0x14   : > { %242 = vadd.xlane.f32.xlu0 %v241_v7  ;;  %v253_v17 = vadd.f32 %v992_v15, %v989_v14  ;;  %v256_v21 = vadd.f32 %v1002_v19, %v999_v18  ;;  %v1009_v22 = vld [vmem:[%s950_s23 + $0x60] sm:$0xff]  ;;  %v1012_v23 = vld [vmem:[%s950_s23 + $0x68] sm:$0xff]  ;;  %v285_v24 = vmax.f32 %v989_v14, %v992_v15  ;;  %v1019_v26 = vld [vmem:[%s950_s23 + $0x70] sm:$0xff]  ;;  %v288_v28 = vmax.f32 %v999_v18, %v1002_v19 }
  0x15   : > { %v259_v25 = vadd.f32 %v1012_v23, %v1009_v22  ;;  %v1022_v27 = vld [vmem:[%s950_s23 + $0x78] sm:$0xff]  ;;  %v291_v31 = vmax.f32 %v1009_v22, %v1012_v23  ;;  %865 = vmatpush3.bf16.msra.mxu0 %v864_v44  ;;  %877 = vmatpush3.bf16.msra.mxu1 %v864_v44 }
  0x16   : > { %v262_v29 = vadd.f32 %v1022_v27, %v1019_v26  ;;  %v294_v30 = vmax.f32 %v1019_v26, %v1022_v27  ;;  %849 = vmatprep.subr.mxu0 %v903_v45 }
  0x17   : > { %251 = vadd.xlane.f32.xlu1 %v250_v10 }
  0x18   : > { %245 = vadd.xlane.f32.xlu0 %v244_v11  ;;  %v348_v11 = vadd.s32 4294967256, %v315_v51 }
  0x1b   : > { %277 = vmax.xlane.f32.xlu1 %v276_v12  ;;  %v330_v12 = vsub.s32 %v327_v59, %v1061_v55 }
  0x1c   : > { %274 = vmax.xlane.f32.xlu0 %v273_v13 }
  0x1f   : > { %280 = vmax.xlane.f32.xlu1 %v279_v16 }
  0x20   : > { %254 = vadd.xlane.f32.xlu0 %v253_v17  ;;  %v355_v17 = vadd.s32 4294967248, %v315_v51 }
  0x22   : > { %v358_v35 = vsub.s32 %v355_v17, %v1061_v55 }
  0x23   : > { %283 = vmax.xlane.f32.xlu1 %v282_v20 }
  0x24   : > { %257 = vadd.xlane.f32.xlu0 %v256_v21  ;;  %v337_v21 = vsub.s32 %v334_v63, %v1061_v55 }
  0x27   : > { %286 = vmax.xlane.f32.xlu1 %v285_v24 }
  0x28   : > { %260 = vadd.xlane.f32.xlu0 %v259_v25  ;;  %v344_v25 = vsub.s32 %v341_v3, %v1061_v55 }
  0x2b   : > { %289 = vmax.xlane.f32.xlu1 %v288_v28 }
  0x2c   : > { %263 = vadd.xlane.f32.xlu0 %v262_v29 }
  0x2f   : > { %295 = vmax.xlane.f32.xlu1 %v294_v30  ;;  %v351_v30 = vsub.s32 %v348_v11, %v1061_v55 }
  0x30   : > { %292 = vmax.xlane.f32.xlu0 %v291_v31 }
  0xa0   : > { %v249_v46 = vpop.xlane.xlu1 %248 }
  0xa1   : > { %v243_v47 = vpop.xlane.xlu0 %242  ;;  %v267_v13 = vmul.f32 0.00390625, %v249_v46 }
  0xa2   : > { %v265_v62 = vmul.f32 0.00390625, %v243_v47  ;;  %v365_v47 = vsub.s32 %v362_v33, %v1061_v55 }
  0xa3   : > { %v331_v34 = vrot.slane %v267_v13, %v330_v12 }
  0xa4   : > { %v252_v49 = vpop.xlane.xlu1 %251  ;;  %v319_v20 = vrot.slane %v265_v62, %v318_v61 }
  0xa5   : > { %v246_v50 = vpop.xlane.xlu0 %245  ;;  %v268_v24 = vmul.f32 0.00390625, %v252_v49 }
  0xa6   : > { %v266_v57 = vmul.f32 0.00390625, %v246_v50 }
  0xa7   : > { %v338_v37 = vrot.slane %v268_v24, %v337_v21 }
  0xa8   : > { %v278_v53 = vpop.xlane.xlu1 %277  ;;  %v324_v7 = vrot.slane %v266_v57, %v323_v56 }
  0xa9   : > { %v275_v54 = vpop.xlane.xlu0 %274  ;;  %v458_v39 = vrot.slane %v278_v53, %v323_v56 }
  0xaa   : > { %v326_v29 = vsel %vm325_vm1, %v324_v7, %v319_v20  ;;  %v454_v40 = vrot.slane %v275_v54, %v318_v61  ;;  %v564_v20 = vld [vmem:[%s1142_s3] sm:$0xf] }
  0xab   : > { %v333_v41 = vsel %vm332_vm2, %v331_v34, %v326_v29  ;;  %v565_v34 = vld [vmem:[%s1143_s4] sm:$0x1] }
  0xac   : > { %v281_v58 = vpop.xlane.xlu1 %280  ;;  %v340_v51 = vsel %vm339_vm3, %v338_v37, %v333_v41  ;;  %v459_v53 = vsel %vm325_vm1, %v458_v39, %v454_v40 }
  0xad   : > { %v255_v60 = vpop.xlane.xlu0 %254  ;;  %v463_v43 = vrot.slane %v281_v58, %v330_v12 }
  0xae   : > { %v269_v28 = vmul.f32 0.00390625, %v255_v60 }
  0xaf   : > { %v464_v58 = vsel %vm332_vm2, %v463_v43, %v459_v53 }
  0xb0   : > { %v284_v10 = vpop.xlane.xlu1 %283  ;;  %v345_v42 = vrot.slane %v269_v28, %v344_v25 }
  0xb1   : > { %v258_v16 = vpop.xlane.xlu0 %257  ;;  %v468_v48 = vrot.slane %v284_v10, %v337_v21  ;;  %v305_v21 = vld [vmem:[%s1141_s2] sm:$0x1] }
  0xb2   : > { %v270_v31 = vmul.f32 0.00390625, %v258_v16  ;;  %v347_v54 = vsel %vm346_vm4, %v345_v42, %v340_v51  ;;  %v653_v42 = vsub.s32 0, %v1061_v55 }
  0xb3   : > { %v469_v62 = vsel %vm339_vm3, %v468_v48, %v464_v58 }
  0xb4   : > { %v287_v32 = vpop.xlane.xlu1 %286  ;;  %v352_v44 = vrot.slane %v270_v31, %v351_v30 }
  0xb5   : > { %v261_v36 = vpop.xlane.xlu0 %260  ;;  %v473_v52 = vrot.slane %v287_v32, %v344_v25 }
  0xb6   : > { %v271_v38 = vmul.f32 0.00390625, %v261_v36  ;;  %v354_v59 = vsel %vm353_vm5, %v352_v44, %v347_v54 }
  0xb7   : > { %v474_v10 = vsel %vm346_vm4, %v473_v52, %v469_v62 }
  0xb8   : > { %v290_v46 = vpop.xlane.xlu1 %289  ;;  %v359_v49 = vrot.slane %v271_v38, %v358_v35 }
  0xb9   : > { %v264_v50 = vpop.xlane.xlu0 %263  ;;  %v478_v56 = vrot.slane %v290_v46, %v351_v30 }
  0xba   : > { %v272_v57 = vmul.f32 0.00390625, %v264_v50  ;;  %v361_v7 = vsel %vm360_vm6, %v359_v49, %v354_v59 }
  0xbb   : > { %v479_v13 = vsel %vm353_vm5, %v478_v56, %v474_v10 }
  0xbc   : > { %v366_v60 = vrot.slane %v272_v57, %v365_v47  ;;  %v296_v61 = vpop.xlane.xlu1 %295 }
  0xbd   : > { %v293_v63 = vpop.xlane.xlu0 %292  ;;  %v488_v3 = vrot.slane %v296_v61, %v365_v47 }
  0xbe   : > { %v483_v11 = vrot.slane %v293_v63, %v358_v35  ;;  %v368_v12 = vsel %vm367_vm7, %v366_v60, %v361_v7  ;;  %v566_v35 = vmul.f32 2.0, %v565_v34 }
  0xbf   : > { %828 = vmatmul.mubr.msk.f32.vlgmr.msra.gmra.mrb[0].mxu0 %vm369_vm8, %v368_v12 }
  0xc0   : > { %v484_v16 = vsel %vm360_vm6, %v483_v11, %v479_v13  ;;  %851 = vmatprep.mubr.msk.f32.mxu0 %vm902_vm0, %v903_v45  ;;  %850 = vmatpush3.msk.msra.mxu0 %vm571_vm9, %v564_v20 }
  0xc1   : > { %v489_v17 = vsel %vm367_vm7, %v488_v3, %v484_v16 }
  0xc2   : > { %847 = vmatmul.mubr.msk.f32.vlgmr.msra.gmra.mrb[0].mxu1 %vm369_vm8, %v489_v17 }
 0x192   : > { %v438_v24 = vpop.f32.mrb[0].mxu0 }
 0x193   : > { %v829_v25 = vpop.f32.mrb[1].mxu0  ;;  %v439_v28 = vadd.f32 %v438_v24, %v305_v21 }
 0x195   : > { %v558_v29 = vpop.f32.mrb[0].mxu1  ;;  %v442_v45 = vmax.f32 %v439_v28, 0.0 }
 0x196   : > { %v559_v30 = vadd.f32 %v558_v29, %v305_v21  ;;  %v848_v31 = vpop.f32.mrb[1].mxu1 }
 0x198   : > { %v562_v32 = vmax.f32 %v559_v30, 0.0 }
 0x19a   : > { %v563_v33 = vadd.f32 %v562_v32, %v442_v45 }
 0x19c   : > { %852 = vmatmul.mubr.msk.f32.vlgmr.msra.gmra.mrb[2].mxu0 %vm567_vm10, %v563_v33 }
 0x26f   : > { %v641_v36 = vpop.f32.mrb[2].mxu0 }
 0x270   : > { %v642_v37 = vadd.f32 %v641_v36, %v566_v35  ;;  %v853_v38 = vpop.f32.mrb[3].mxu0 }
 0x272   : > { %v786_v39 = vmul.f32 -1.442695, %v642_v37 }
 0x274   : > { %889 = vpow2.f32 %v786_v39 }
 0x27e   : > { %v890_v40 = vpop.eup %889 }
 0x27f   : > { %v648_v41 = vadd.f32 1.0, %v890_v40 }
 0x281   : > { %891 = vrcp.f32 %v648_v41 }
 0x28b   : > { %v892_v43 = vpop.eup %891 }
 0x28c   : > { %v654_v44 = vrot.slane %v892_v43, %v653_v42 }
 0x28e   : > { %660 = vbcast.lane.b32.xlu1 %v654_v44, 264  ;;  %656 = vbcast.lane.b32.xlu0 %v654_v44, 256 }
 0x292   : > { %664 = vbcast.lane.b32.xlu1 %v654_v44, 272  ;;  %672 = vbcast.lane.b32.xlu0 %v654_v44, 288 }
 0x296   : > { %668 = vbcast.lane.b32.xlu1 %v654_v44, 280  ;;  %680 = vbcast.lane.b32.xlu0 %v654_v44, 304 }
 0x29a   : > { %676 = vbcast.lane.b32.xlu1 %v654_v44, 296 }
 0x29e   : > { %684 = vbcast.lane.b32.xlu1 %v654_v44, 312 }
 0x300   : > { %v661_v55 = vpop.permute.xlu1 %660  ;;  %v657_v46 = vpop.permute.xlu0 %656 }
 0x301   : > { %v688_v47 = vmul.f32 %v661_v55, %v975_v8  ;;  %v689_v48 = vmul.f32 %v661_v55, %v978_v9  ;;  %v686_v49 = vmul.f32 %v657_v46, %v959_v2  ;;  %v687_v50 = vmul.f32 %v657_v46, %v964_v4 }
 0x303   : > { %704 = vst [vmem:[%s1102_s26 + $0x10] sm:$0xff] %v688_v47  ;;  %705 = vst [vmem:[%s1102_s26 + $0x18] sm:$0xff] %v689_v48 }
 0x304   : > { %702 = vst [vmem:[%s1102_s26] sm:$0xff] %v686_v49  ;;  %703 = vst [vmem:[%s1102_s26 + $0x8] sm:$0xff] %v687_v50  ;;  %v665_v51 = vpop.permute.xlu1 %664  ;;  %v673_v52 = vpop.permute.xlu0 %672 }
 0x305   : > { %v690_v57 = vmul.f32 %v665_v51, %v953_v0  ;;  %v691_v8 = vmul.f32 %v665_v51, %v956_v1  ;;  %v694_v9 = vmul.f32 %v673_v52, %v989_v14  ;;  %v695_v2 = vmul.f32 %v673_v52, %v992_v15 }
 0x307   : > { %706 = vst [vmem:[%s1102_s26 + $0x20] sm:$0xff] %v690_v57  ;;  %707 = vst [vmem:[%s1102_s26 + $0x28] sm:$0xff] %v691_v8 }
 0x308   : > { %710 = vst [vmem:[%s1102_s26 + $0x40] sm:$0xff] %v694_v9  ;;  %711 = vst [vmem:[%s1102_s26 + $0x48] sm:$0xff] %v695_v2  ;;  %v669_v4 = vpop.permute.xlu1 %668  ;;  %v681_v53 = vpop.permute.xlu0 %680 }
 0x309   : > { %v692_v54 = vmul.f32 %v669_v4, %v967_v5  ;;  %v693_v0 = vmul.f32 %v669_v4, %v970_v6  ;;  %v698_v1 = vmul.f32 %v681_v53, %v1009_v22  ;;  %v699_v14 = vmul.f32 %v681_v53, %v1012_v23 }
 0x30b   : > { %708 = vst [vmem:[%s1102_s26 + $0x30] sm:$0xff] %v692_v54  ;;  %709 = vst [vmem:[%s1102_s26 + $0x38] sm:$0xff] %v693_v0 }
 0x30c   : > { %714 = vst [vmem:[%s1102_s26 + $0x60] sm:$0xff] %v698_v1  ;;  %715 = vst [vmem:[%s1102_s26 + $0x68] sm:$0xff] %v699_v14  ;;  %v677_v15 = vpop.permute.xlu1 %676 }
 0x30d   : > { %v696_v56 = vmul.f32 %v677_v15, %v999_v18  ;;  %v697_v58 = vmul.f32 %v677_v15, %v1002_v19 }
 0x30f   : > { %712 = vst [vmem:[%s1102_s26 + $0x50] sm:$0xff] %v696_v56  ;;  %713 = vst [vmem:[%s1102_s26 + $0x58] sm:$0xff] %v697_v58 }
 0x310   : > { %v685_v5 = vpop.permute.xlu1 %684 }
 0x311   : > { %v700_v59 = vmul.f32 %v685_v5, %v1019_v26  ;;  %v701_v6 = vmul.f32 %v685_v5, %v1022_v27 }
 0x313   : > { %716 = vst [vmem:[%s1102_s26 + $0x70] sm:$0xff] %v700_v59  ;;  %717 = vst [vmem:[%s1102_s26 + $0x78] sm:$0xff] %v701_v6 }
 0x314 PF: > { %s15_s18 = sadd.s32 1, %s899_s18  }
 0x315   : > { %p12_p4 = scmp.ge.s32.totalorder %s15_s18, 4  }
 0x317   :  { %14 = sbr.rel (!%p12_p4) target bundleno = 1 (0x1), region = 70 }

</bundles_post_ra>
